<compile_context>
chip_gen: v6e
topology: v6e:2x2x1
jax: 0.10.0
libtpu: 0.0.40
codegen_flags: <defaults>
</compile_context>

<pallas_src>
import functools
import math

import jax
import jax.numpy as jnp
from jax.experimental import pallas as pl
from jax.experimental.pallas import tpu as pltpu


_TARGET_BLOCK_BYTES = 4 * 1024 * 1024     # ~4 MiB blocks -> <10% per-step overhead on v7x
_VMEM_LIMIT_BYTES = 32 * 1024 * 1024      # safe on v5e/v6e (128 MiB) and v7x (64 MiB)
_FUSED_MAX_F32_BYTES = 4 * 1024 * 1024    # fused single-pass path threshold (x as f32)


# ---------------------------------------------------------------------------
# Tiling helpers
# ---------------------------------------------------------------------------
def _choose_tiles(rows, cols, itemsize, target_bytes):
    """Pick (tile_rows, block_cols) targeting ~target_bytes blocks."""
    # Always cap block width for very wide inputs so block bytes stay bounded;
    # ragged last column blocks are handled by Pallas OOB read/write discard
    # (per-column math never mixes columns in either kernel).
    block_cols = cols if cols <= 4096 else 2048

    bytes_per_row = max(1, block_cols * itemsize)
    tile_rows = max(1, target_bytes // bytes_per_row)
    tile_rows = max(8, (tile_rows // 8) * 8)   # multiple of 8 sublanes
    if tile_rows >= rows:
        tile_rows = rows                       # full extent (always legal)
    return tile_rows, block_cols


def _pack_for_lanes(x2d):
    """Reshape (N, F) -> (N//k, k*F) so the last dim is a multiple of 128."""
    n, f = x2d.shape
    if f % 128 == 0:
        return x2d, 1
    k = 128 // math.gcd(f, 128)
    if k > 1 and n % k == 0:
        return x2d.reshape(n // k, k * f), k
    return x2d, 1


# ---------------------------------------------------------------------------
# Kernel 1: per-feature sum / sum-of-squares (streaming training stats)
# ---------------------------------------------------------------------------
def _stats_kernel(x_ref, sum_ref, sq_ref, *, rows, tile_rows, blocks_per_split,
                  need_mask):
    i = pl.program_id(2)   # reduction axis, innermost

    @pl.when(i == 0)
    def _init():
        sum_ref[...] = jnp.zeros_like(sum_ref)
        sq_ref[...] = jnp.zeros_like(sq_ref)

    def _accumulate(x):
        sum_ref[...] += jnp.sum(x, axis=0, keepdims=True)
        sq_ref[...] += jnp.sum(x * x, axis=0, keepdims=True)

    if not need_mask:
        _accumulate(x_ref[...].astype(jnp.float32))
    else:
        # Only the ragged / fully-out-of-range blocks pay for the mask; full
        # tiles take the cheap unmasked path.
        c = pl.program_id(0)
        row_start = (c * blocks_per_split + i) * tile_rows
        is_full = row_start + tile_rows <= rows

        @pl.when(is_full)
        def _full():
            _accumulate(x_ref[...].astype(jnp.float32))

        @pl.when(jnp.logical_not(is_full))
        def _ragged():
            x = x_ref[...].astype(jnp.float32)
            r = jax.lax.broadcasted_iota(jnp.int32, x.shape, 0) + row_start
            _accumulate(jnp.where(r < rows, x, 0.0))


def _batch_stats(x2d, *, target_block_bytes=_TARGET_BLOCK_BYTES):
    rows, cols = x2d.shape
    tile_rows, block_cols = _choose_tiles(rows, cols, x2d.dtype.itemsize,
                                          target_block_bytes)
    n_row_blocks = pl.cdiv(rows, tile_rows)
    n_col = pl.cdiv(cols, block_cols)

    # Two-way reduction split: gives v7x megacore a real "parallel" axis; on
    # single-TC chips it only costs one extra tiny accumulator writeback.
    n_split = 2 if n_row_blocks >= 2 else 1
    blocks_per_split = pl.cdiv(n_row_blocks, n_split)

    padded_blocks = n_split * blocks_per_split
    has_oob_blocks = padded_blocks > n_row_blocks
    need_mask = has_oob_blocks or (rows % tile_rows != 0)

    def x_map(c, j, i):
        blk = c * blocks_per_split + i
        if has_oob_blocks:
            # Keep the DMA in bounds; the kernel masks the duplicate rows out.
            blk = jnp.minimum(blk, n_row_blocks - 1)
        return (blk, j)

    kernel = functools.partial(
        _stats_kernel,
        rows=rows,
        tile_rows=tile_rows,
        blocks_per_split=blocks_per_split,
        need_mask=need_mask,
    )

    s, sq = pl.pallas_call(
        kernel,
        out_shape=(jax.ShapeDtypeStruct((n_split, cols), jnp.float32),
                   jax.ShapeDtypeStruct((n_split, cols), jnp.float32)),
        grid_spec=pltpu.PrefetchScalarGridSpec(
            num_scalar_prefetch=0,
            grid=(n_split, n_col, blocks_per_split),      # reduction axis last
            in_specs=[pl.BlockSpec((tile_rows, block_cols), x_map)],
            out_specs=(pl.BlockSpec((1, block_cols), lambda c, j, i: (c, j)),
                       pl.BlockSpec((1, block_cols), lambda c, j, i: (c, j))),
        ),
        compiler_params=pltpu.CompilerParams(
            dimension_semantics=("parallel", "parallel", "arbitrary"),
            vmem_limit_bytes=_VMEM_LIMIT_BYTES,
        ),
    )(x2d)
    return s.sum(axis=0), sq.sum(axis=0)


# ---------------------------------------------------------------------------
# Kernel 2: fused affine normalization  y = x * scale + shift   (streaming)
# ---------------------------------------------------------------------------
def _norm_kernel(x_ref, scale_ref, shift_ref, o_ref):
    x = x_ref[...].astype(jnp.float32)
    o_ref[...] = (x * scale_ref[...] + shift_ref[...]).astype(o_ref.dtype)


def _affine_normalize(x2d, scale, shift, *, target_block_bytes=_TARGET_BLOCK_BYTES):
    rows, cols = x2d.shape
    tile_rows, block_cols = _choose_tiles(rows, cols, x2d.dtype.itemsize,
                                          target_block_bytes)
    n_row = pl.cdiv(rows, tile_rows)
    n_col = pl.cdiv(cols, block_cols)

    return pl.pallas_call(
        _norm_kernel,
        out_shape=jax.ShapeDtypeStruct((rows, cols), x2d.dtype),
        grid_spec=pltpu.PrefetchScalarGridSpec(
            num_scalar_prefetch=0,
            # Column axis outermost: scale/shift blocks are fetched n_col times
            # instead of n_row * n_col times.
            grid=(n_col, n_row),
            in_specs=[pl.BlockSpec((tile_rows, block_cols), lambda j, i: (i, j)),
                      pl.BlockSpec((1, block_cols), lambda j, i: (0, j)),
                      pl.BlockSpec((1, block_cols), lambda j, i: (0, j))],
            out_specs=pl.BlockSpec((tile_rows, block_cols), lambda j, i: (i, j)),
        ),
        compiler_params=pltpu.CompilerParams(
            dimension_semantics=("parallel", "parallel"),
            vmem_limit_bytes=_VMEM_LIMIT_BYTES,
        ),
    )(x2d, scale.reshape(1, cols), shift.reshape(1, cols))


# ---------------------------------------------------------------------------
# Kernel 3: fused single-pass training forward (input resident in VMEM)
# ---------------------------------------------------------------------------
def _fused_train_kernel(x_ref, gamma_ref, beta_ref, y_ref, mean_ref, var_ref,
                        *, rows, eps):
    x = x_ref[...].astype(jnp.float32)
    inv_n = jnp.float32(1.0 / rows)
    mean = jnp.sum(x, axis=0, keepdims=True) * inv_n
    # E[x^2] - E[x]^2 in f32 (clamped); matches torch.var(unbiased=False) to
    # the tested tolerance for normalized-scale data.
    var = jnp.maximum(jnp.sum(x * x, axis=0, keepdims=True) * inv_n - mean * mean,
                      0.0)
    scale = gamma_ref[...] * jax.lax.rsqrt(var + eps)
    shift = beta_ref[...] - mean * scale
    y_ref[...] = (x * scale + shift).astype(y_ref.dtype)
    mean_ref[...] = mean
    var_ref[...] = var


def _fused_train_forward(x2d, gamma2d, beta2d, eps):
    rows, cols = x2d.shape
    kernel = functools.partial(_fused_train_kernel, rows=rows, eps=float(eps))
    return pl.pallas_call(
        kernel,
        out_shape=(jax.ShapeDtypeStruct((rows, cols), x2d.dtype),
                   jax.ShapeDtypeStruct((1, cols), jnp.float32),
                   jax.ShapeDtypeStruct((1, cols), jnp.float32)),
        compiler_params=pltpu.CompilerParams(vmem_limit_bytes=_VMEM_LIMIT_BYTES),
    )(x2d, gamma2d, beta2d)


# ---------------------------------------------------------------------------
# Module wrapper (mirrors the PyTorch `BatchNorm`)
# ---------------------------------------------------------------------------
class BatchNorm:
    """JAX/Pallas counterpart of the custom PyTorch BatchNorm (EMA stats)."""

    def __init__(self, num_features, eps=1e-5, momentum=0.1):
        self.num_features = num_features
        self.eps = eps
        self.momentum = momentum
        self.gamma = jnp.ones((num_features,), jnp.float32)
        self.beta = jnp.zeros((num_features,), jnp.float32)
        self.running_mean = jnp.zeros((num_features,), jnp.float32)
        self.running_var = jnp.ones((num_features,), jnp.float32)
        self.training = True
        # Tunables (exposed mainly so tests can force the streaming path).
        self._fused_max_f32_bytes = _FUSED_MAX_F32_BYTES
        self._target_block_bytes = _TARGET_BLOCK_BYTES

    def train(self):
        self.training = True
        return self

    def eval(self):
        self.training = False
        return self

    def __call__(self, x):
        if x.ndim != 2 or x.shape[-1] != self.num_features:
            raise ValueError(
                f"expected input of shape (N, {self.num_features}), got {x.shape}")
        n, f = x.shape
        m = self.momentum

        # ---- fused single-pass training path (input fits in VMEM) ----
        if self.training and n * f * 4 <= self._fused_max_f32_bytes:
            gamma2 = self.gamma.reshape(1, f).astype(jnp.float32)
            beta2 = self.beta.reshape(1, f).astype(jnp.float32)
            y, mean2, var2 = _fused_train_forward(x, gamma2, beta2, self.eps)
            mean, var = mean2[0], var2[0]
            self.running_mean = (1.0 - m) * self.running_mean + m * mean
            self.running_var = (1.0 - m) * self.running_var + m * var
            return y

        # ---- streaming path ----
        x_packed, k = _pack_for_lanes(x)

        if self.training:
            s, sq = _batch_stats(x_packed,
                                 target_block_bytes=self._target_block_bytes)
            if k > 1:
                s = s.reshape(k, f).sum(axis=0)
                sq = sq.reshape(k, f).sum(axis=0)
            mean = s / n
            var = jnp.maximum(sq / n - mean * mean, 0.0)   # biased (unbiased=False)
            self.running_mean = (1.0 - m) * self.running_mean + m * mean
            self.running_var = (1.0 - m) * self.running_var + m * var
        else:
            mean = self.running_mean
            var = self.running_var

        inv = jax.lax.rsqrt(var.astype(jnp.float32) + self.eps)
        scale = (self.gamma * inv).astype(jnp.float32)
        shift = (self.beta - mean * scale).astype(jnp.float32)
        if k > 1:
            scale = jnp.tile(scale, k)
            shift = jnp.tile(shift, k)

        y_packed = _affine_normalize(x_packed, scale, shift,
                                     target_block_bytes=self._target_block_bytes)
        return y_packed.reshape(n, f)


# ---------------------------------------------------------------------------
# Self-test
# ---------------------------------------------------------------------------
def _torch_ref(x, gamma, beta, eps):
    mean = jnp.mean(x, axis=0)
    var = jnp.var(x, axis=0)  # biased, matches unbiased=False
    return gamma * (x - mean) / jnp.sqrt(var + eps) + beta, mean, var


if __name__ == "__main__":
    ok = True

    # ---- Test 1: fused single-pass training path, then eval path ----
    N, F = 16, 32
    x = jax.random.normal(jax.random.PRNGKey(0), (N, F), dtype=jnp.float32)
    bn = BatchNorm(F)
    kg, kb = jax.random.split(jax.random.PRNGKey(1))
    bn.gamma = 1.0 + 0.1 * jax.random.normal(kg, (F,), jnp.float32)
    bn.beta = 0.1 * jax.random.normal(kb, (F,), jnp.float32)

    y = jax.block_until_ready(bn(x))
    ref, mean, var = _torch_ref(x, bn.gamma, bn.beta, bn.eps)
    assert y.shape == x.shape and y.dtype == x.dtype
    assert jnp.allclose(y, ref, atol=1e-5, rtol=1e-5), "fused train mismatch"
    rm_ref = bn.momentum * mean
    rv_ref = (1.0 - bn.momentum) * jnp.ones((F,)) + bn.momentum * var
    assert jnp.allclose(bn.running_mean, rm_ref, atol=1e-6), "running_mean mismatch"
    assert jnp.allclose(bn.running_var, rv_ref, atol=1e-6), "running_var mismatch"

    bn.eval()
    y_eval = jax.block_until_ready(bn(x))
    ref_eval = (bn.gamma * (x - bn.running_mean)
                / jnp.sqrt(bn.running_var + bn.eps) + bn.beta)
    assert jnp.allclose(y_eval, ref_eval, atol=1e-5, rtol=1e-5), "eval mismatch"

    # ---- Test 2: streaming path with ragged rows, 2-way reduction split,
    #              clamped out-of-range block (forced via tiny block target) ----
    N2, F2 = 132, 32
    x2 = jax.random.normal(jax.random.PRNGKey(2), (N2, F2), dtype=jnp.float32)
    bn2 = BatchNorm(F2)
    bn2.gamma = 1.0 + 0.1 * jax.random.normal(kg, (F2,), jnp.float32)
    bn2.beta = 0.1 * jax.random.normal(kb, (F2,), jnp.float32)
    bn2._fused_max_f32_bytes = 0          # force the streaming kernels
    bn2._target_block_bytes = 8 * 1024    # force multiple row blocks + masking

    y2 = jax.block_until_ready(bn2(x2))
    ref2, mean2, var2 = _torch_ref(x2, bn2.gamma, bn2.beta, bn2.eps)
    assert jnp.allclose(y2, ref2, atol=1e-5, rtol=1e-5), "streaming train mismatch"
    assert jnp.allclose(bn2.running_mean, bn2.momentum * mean2, atol=1e-6)
    assert jnp.allclose(bn2.running_var,
                        (1.0 - bn2.momentum) + bn2.momentum * var2, atol=1e-6)

    # ---- Test 3: wide input with ragged last COLUMN block (capped block_cols) ----
    N3, F3 = 8, 4224   # 4224 = 2*2048 + 128 -> ragged last column block
    x3 = jax.random.normal(jax.random.PRNGKey(3), (N3, F3), dtype=jnp.float32)
    bn3 = BatchNorm(F3)
    bn3._fused_max_f32_bytes = 0
    y3 = jax.block_until_ready(bn3(x3))
    ref3, _, _ = _torch_ref(x3, bn3.gamma, bn3.beta, bn3.eps)
    assert jnp.allclose(y3, ref3, atol=1e-5, rtol=1e-5), "ragged-column mismatch"

    if ok:
        print("KERNEL_OK")
</pallas_src>

<mosaic_0001>
module attributes {stable_mosaic.version = 11 : i64} {
  func.func @_fused_train_kernel(%arg0: memref<16x32xf32, #tpu.memory_space<vmem>>, %arg1: memref<1x32xf32, #tpu.memory_space<vmem>>, %arg2: memref<1x32xf32, #tpu.memory_space<vmem>>, %arg3: memref<16x32xf32, #tpu.memory_space<vmem>>, %arg4: memref<1x32xf32, #tpu.memory_space<vmem>>, %arg5: memref<1x32xf32, #tpu.memory_space<vmem>>) attributes {dimension_semantics = [], scalar_prefetch = 0 : i64, scratch_operands = 0 : i64, tpu.core_type = #tpu.core_type<tc>} {
    %c0 = arith.constant 0 : index
    %c0_0 = arith.constant 0 : index
    %0 = vector.load %arg0[%c0, %c0_0] : memref<16x32xf32, #tpu.memory_space<vmem>>, vector<16x32xf32>
    %cst = arith.constant dense<0.000000e+00> : vector<32xf32>
    %1 = vector.multi_reduction <add>, %0, %cst [0] : vector<16x32xf32> to vector<32xf32>
    %2 = vector.shape_cast %1 : vector<32xf32> to vector<1x32xf32>
    %cst_1 = arith.constant 6.250000e-02 : f32
    %3 = vector.broadcast %cst_1 : f32 to vector<1x32xf32>
    %4 = arith.mulf %2, %3 : vector<1x32xf32>
    %5 = arith.mulf %0, %0 : vector<16x32xf32>
    %cst_2 = arith.constant dense<0.000000e+00> : vector<32xf32>
    %6 = vector.multi_reduction <add>, %5, %cst_2 [0] : vector<16x32xf32> to vector<32xf32>
    %7 = vector.shape_cast %6 : vector<32xf32> to vector<1x32xf32>
    %cst_3 = arith.constant 6.250000e-02 : f32
    %8 = vector.broadcast %cst_3 : f32 to vector<1x32xf32>
    %9 = arith.mulf %7, %8 : vector<1x32xf32>
    %10 = arith.mulf %4, %4 : vector<1x32xf32>
    %11 = arith.subf %9, %10 : vector<1x32xf32>
    %cst_4 = arith.constant 0.000000e+00 : f32
    %12 = vector.broadcast %cst_4 : f32 to vector<1x32xf32>
    %13 = arith.maximumf %11, %12 : vector<1x32xf32>
    %c0_5 = arith.constant 0 : index
    %c0_6 = arith.constant 0 : index
    %14 = vector.load %arg1[%c0_5, %c0_6] : memref<1x32xf32, #tpu.memory_space<vmem>>, vector<1x32xf32>
    %cst_7 = arith.constant 9.99999974E-6 : f32
    %15 = vector.broadcast %cst_7 : f32 to vector<1x32xf32>
    %16 = arith.addf %13, %15 : vector<1x32xf32>
    %17 = math.rsqrt %16 : vector<1x32xf32>
    %18 = arith.mulf %14, %17 : vector<1x32xf32>
    %c0_8 = arith.constant 0 : index
    %c0_9 = arith.constant 0 : index
    %19 = vector.load %arg2[%c0_8, %c0_9] : memref<1x32xf32, #tpu.memory_space<vmem>>, vector<1x32xf32>
    %20 = arith.mulf %4, %18 : vector<1x32xf32>
    %21 = arith.subf %19, %20 : vector<1x32xf32>
    %22 = vector.broadcast %18 : vector<1x32xf32> to vector<16x32xf32>
    %23 = arith.mulf %0, %22 : vector<16x32xf32>
    %24 = vector.broadcast %21 : vector<1x32xf32> to vector<16x32xf32>
    %25 = arith.addf %23, %24 : vector<16x32xf32>
    %c0_10 = arith.constant 0 : index
    %c0_11 = arith.constant 0 : index
    %26 = vector.load %arg3[%c0_10, %c0_11] : memref<16x32xf32, #tpu.memory_space<vmem>>, vector<16x32xf32>
    tpu.vector_store %arg3[%c0_10, %c0_11], %25 {strides = array<i32>} : memref<16x32xf32, #tpu.memory_space<vmem>>, vector<16x32xf32>,
    %c0_12 = arith.constant 0 : index
    %c0_13 = arith.constant 0 : index
    %27 = vector.load %arg4[%c0_12, %c0_13] : memref<1x32xf32, #tpu.memory_space<vmem>>, vector<1x32xf32>
    tpu.vector_store %arg4[%c0_12, %c0_13], %4 {strides = array<i32>} : memref<1x32xf32, #tpu.memory_space<vmem>>, vector<1x32xf32>,
    %c0_14 = arith.constant 0 : index
    %c0_15 = arith.constant 0 : index
    %28 = vector.load %arg5[%c0_14, %c0_15] : memref<1x32xf32, #tpu.memory_space<vmem>>, vector<1x32xf32>
    tpu.vector_store %arg5[%c0_14, %c0_15], %13 {strides = array<i32>} : memref<1x32xf32, #tpu.memory_space<vmem>>, vector<1x32xf32>,
    return
  }
}

</mosaic_0001>

<bundles_post_ra>
// kernel: tpu_custom_call.1
= control target key start
LH: loop header
LB: loop body
LE: loop exit
PB: predicated region body
PF: predicated region fallthrough
CT: control target
= control target key end

     0   :  { %11 = vsyncpa [#allocation3], 0  ;;  %s307_s0 = inlined_call_operand.hbm [shape: f32[16,32], index: 0, kind: input, shape index: {}]   ;;  %s308_s1 = inlined_call_operand.vmem [shape: f32[1,32], index: 1, kind: input, shape index: {}]   ;;  %s309_s2 = inlined_call_operand.vmem [shape: f32[1,32], index: 2, kind: input, shape index: {}]   ;;  %s310_s3 = inlined_call_operand.hbm [shape: f32[16,32], index: 3, kind: output, shape index: {0}]   ;;  %s311_s4 = inlined_call_operand.hbm [shape: f32[1,32], index: 4, kind: output, shape index: {1}]   ;;  %s312_s5 = inlined_call_operand.hbm [shape: f32[1,32], index: 5, kind: output, shape index: {2}]  }
   0x1   :  { %12 = vsyncpa [#allocation4], 0 }
   0x2   :  { %13 = vsyncpa [#allocation7], 0  ;;  %s227_s18 = smov [#allocation2]  }
   0x3   :  { %s19_s19 = sshll.u32 %s227_s18, 4  ;;  %s20_s19 = int_to_ptr.vmem [resolvable:$true] %s19_s19 }
   0x4   :  { %s149_s20 = scalar_lea.vmem %s20_s19, 256  ;;  %p154_p1 = scmp.lt.s32.totalorder %s20_s19, %s20_s19 }
   0x5   :  { %p150_p0 = scmp.ne.s32.totalorder %s20_s19, %s149_s20  ;;  %p155_p2 = scmp.lt.s32.totalorder %s149_s20, %s149_s20 }
   0x7   :  { %p156_p3 = por %p155_p2, %p154_p1 }
   0x9   :  { %p157_p4 = pnand %p156_p3, %p150_p0 }
   0xb   :  { %160 = shalt.err (!%p157_p4)
}
   0xc   :  { %s228_s21 = smov 128   ;;  %s229_s22 = smov 8  }
   0xd   :  { %25 = dma.hbm_to_vmem [thread:$0]  %s307_s0, 256, %s20_s19, [#allocation3], %s228_s21, %s228_s21, %s229_s22  }
   0xe   :  { %221 = dma.done.wait [#allocation3], 256  }
   0xf   :  { %222 = vsyncadd [#allocation3], 4294967040  ;;  %vm35_vm0 = vcmask 261120   ;;  %v269_v0 = vld [vmem:[#allocation2] sm:$0xff]  ;;  %v271_v1 = vld [vmem:[#allocation2 + $0x8] sm:$0xff]  ;;  %s230_s0 = smov [#allocation6]  }
  0x10   :  { %v36_v2 = vsel %vm35_vm0, %v269_v0, 0.0  ;;  %v37_v3 = vsel %vm35_vm0, %v271_v1, 0.0  ;;  %v46_v4 = vmul.f32 %v269_v0, %v269_v0  ;;  %v47_v5 = vmul.f32 %v271_v1, %v271_v1  ;;  %s107_s25 = sshll.u32 %s230_s0, 4  ;;  %s231_s26 = smov [#allocation8]   ;;  %s108_s25 = int_to_ptr.vmem [resolvable:$true] %s107_s25 }
  0x11   :  { %v38_v6 = vadd.f32 %v37_v3, %v36_v2  ;;  %vm86_vm1 = vcmask 253952   ;;  %s117_s27 = sshll.u32 %s231_s26, 4  ;;  %s161_s28 = scalar_lea.vmem %s108_s25, 16  ;;  %s118_s27 = int_to_ptr.vmem [resolvable:$true] %s117_s27 }
  0x12   :  { %v48_v7 = vsel %vm35_vm0, %v46_v4, 0.0  ;;  %v49_v8 = vsel %vm35_vm0, %v47_v5, 0.0  ;;  %p162_p5 = scmp.ne.s32.totalorder %s108_s25, %s161_s28  ;;  %s165_s29 = scalar_lea.vmem %s108_s25, 32 }
  0x13   :  { %v39_v9 = vrot.slane %v38_v6, 4  ;;  %v50_v10 = vadd.f32 %v49_v8, %v48_v7  ;;  %p166_p6 = scmp.lt.s32.totalorder %s108_s25, %s108_s25  ;;  %p167_p7 = scmp.lt.s32.totalorder %s165_s29, %s161_s28 }
  0x15   :  { %v40_v11 = vadd.f32 %v39_v9, %v38_v6  ;;  %v51_v12 = vrot.slane %v50_v10, 4  ;;  %p168_p8 = por %p167_p7, %p166_p6 }
  0x17   :  { %v41_v13 = vrot.slane %v40_v11, 2  ;;  %v52_v14 = vadd.f32 %v51_v12, %v50_v10  ;;  %p169_p9 = pnand %p168_p8, %p162_p5 }
  0x19   :  { %v42_v15 = vadd.f32 %v41_v13, %v40_v11  ;;  %v53_v16 = vrot.slane %v52_v14, 2 }
  0x1b   :  { %v43_v17 = vrot.slane %v42_v15, 1  ;;  %v54_v18 = vadd.f32 %v53_v16, %v52_v14 }
  0x1d   :  { %v44_v19 = vadd.f32 %v43_v17, %v42_v15  ;;  %v55_v20 = vrot.slane %v54_v18, 1 }
  0x1f   :  { %v45_v21 = vmul.f32 0.0625, %v44_v19  ;;  %v56_v22 = vadd.f32 %v55_v20, %v54_v18 }
  0x21   :  { %v57_v23 = vmul.f32 0.0625, %v56_v22  ;;  %v58_v24 = vmul.f32 %v45_v21, %v45_v21  ;;  %87 = vst.msk [vmem:[#allocation6] sm:$0x1] %vm86_vm1, %v45_v21 }
  0x22   :  { %172 = shalt.err (!%p169_p9)
}
  0x23   :  { %110 = dma.vmem_to_hbm [thread:$0]  %s108_s25, 16, %s311_s4, [#allocation7]   ;;  %v59_v25 = vsub.f32 %v57_v23, %v58_v24 }
  0x24   :  { %s181_s7 = scalar_lea.vmem %s118_s27, 16  ;;  %s185_s8 = scalar_lea.vmem %s118_s27, 32 }
  0x25   :  { %v60_v26 = vmax.f32 %v59_v25, 0.0  ;;  %p182_p10 = scmp.ne.s32.totalorder %s118_s27, %s181_s7  ;;  %p186_p11 = scmp.lt.s32.totalorder %s118_s27, %s118_s27 }
  0x26   :  { %p187_p12 = scmp.lt.s32.totalorder %s185_s8, %s181_s7 }
  0x27   :  { %v62_v27 = vadd.f32 1e-05, %v60_v26  ;;  %88 = vst.msk [vmem:[#allocation8] sm:$0x1] %vm86_vm1, %v60_v26 }
  0x28   :  { %p188_p13 = por %p187_p12, %p186_p11 }
  0x2a   :  { %p189_p0 = pnand %p188_p13, %p182_p10 }
  0x2c   :  { %192 = shalt.err (!%p189_p0)
}
  0x2d   :  { %120 = dma.vmem_to_hbm [thread:$0]  %s118_s27, 16, %s312_s5, [#allocation7]   ;;  %139 = vrsqrt.f32 %v62_v27  ;;  %v69_v28 = vlaneseq  ;;  %v61_v30 = vld [vmem:[%s308_s1] sm:$0x1] }
  0x2e   :  { %v65_v34 = vld [vmem:[%s309_s2] sm:$0x1]  ;;  %s232_s5 = smov [#allocation5]  }
  0x2f   :  { %v70_v29 = vshrl.u32 %v69_v28, 7  ;;  %s94_s14 = sshll.u32 %s232_s5, 4  ;;  %s95_s14 = int_to_ptr.vmem [resolvable:$true] %s94_s14 }
  0x30   :  { %s201_s1 = scalar_lea.vmem %s95_s14, 256  ;;  %p206_p2 = scmp.lt.s32.totalorder %s95_s14, %s95_s14 }
  0x31   :  { %v71_v31 = vsub.s32 0, %v70_v29  ;;  %p202_p1 = scmp.ne.s32.totalorder %s95_s14, %s201_s1  ;;  %p207_p3 = scmp.lt.s32.totalorder %s201_s1, %s201_s1 }
  0x33   :  { %p208_p4 = por %p207_p3, %p206_p2 }
  0x35   :  { %p209_p5 = pnand %p208_p4, %p202_p1 }
  0x3a   :  { %v140_v32 = vpop.eup %139 }
  0x3b   :  { %v64_v33 = vmul.f32 %v140_v32, %v61_v30 }
  0x3d   :  { %v66_v35 = vmul.f32 %v64_v33, %v45_v21  ;;  %v72_v36 = vrot.slane %v64_v33, %v71_v31 }
  0x3f   :  { %v67_v37 = vsub.f32 %v65_v34, %v66_v35  ;;  %v74_v38 = vmul.f32 %v72_v36, %v269_v0  ;;  %v75_v39 = vmul.f32 %v72_v36, %v271_v1 }
  0x41   :  { %v80_v40 = vrot.slane %v67_v37, %v71_v31 }
  0x43   :  { %v82_v41 = vadd.f32 %v80_v40, %v74_v38  ;;  %v83_v42 = vadd.f32 %v80_v40, %v75_v39 }
  0x45   :  { %84 = vst.msk [vmem:[#allocation5] sm:$0xff] %vm35_vm0, %v82_v41  ;;  %85 = vst.msk [vmem:[#allocation5 + $0x8] sm:$0xff] %vm35_vm0, %v83_v42 }
  0x46   :  { %212 = shalt.err (!%p209_p5)
}
  0x47   :  { %100 = dma.vmem_to_hbm [thread:$0]  %s95_s14, 256, %s310_s3, [#allocation4], %s228_s21, %s228_s21, %s229_s22  }
  0x48   :  { %223 = dma.done.wait [#allocation4], 256  }
  0x49   :  { %224 = vsyncadd [#allocation4], 4294967040 }
  0x4a   :  { %225 = dma.done.wait [#allocation7], 32  }
  0x4b   :  { %226 = vsyncadd [#allocation7], 4294967264 }
  0x4c   :  { %130 = vsyncpa [#allocation3], 1 }
  0x4d   :  { %131 = vsyncpa [#allocation4], 1 }
  0x4e   :  { %132 = vsyncpa [#allocation7], 1 }

</bundles_post_ra>
